<compile_context>
chip_gen: v7x
topology: tpu7x:2x2x1
jax: 0.10.0
libtpu: 0.0.40
codegen_flags: <defaults>
</compile_context>

<pallas_src>
import functools

import jax
import jax.numpy as jnp
from jax.experimental import pallas as pl
from jax.experimental.pallas import tpu as pltpu

HIDDEN1 = 500
HIDDEN1_PAD = 512   # 500 -> 512 (4 * 128 lanes)
HIDDEN2 = 128
LANE = 128
SUBLANE = 8
TILE_B_MAX = 1024   # large tiles: step overhead + RHS re-push amortization


def _round_up(x, m):
    return ((x + m - 1) // m) * m


def actor_kernel(obs_ref, w1_ref, b1_ref, w2_ref, b2_ref, w3_ref, b3_ref,
                 out_ref):
    # obs streamed as f32 (single HBM read); cast to bf16 on the VPU here.
    obs = obs_ref[...].astype(jnp.bfloat16)
    # FC1 + ReLU  (bf16 MXU operands -> f32 accumulate, bias/ReLU in f32,
    # cast folded into the activation so the live temp is bf16).
    h1 = jnp.dot(obs, w1_ref[...],
                 preferred_element_type=jnp.float32) + b1_ref[...]
    h1 = jnp.maximum(h1, 0.0).astype(jnp.bfloat16)
    # FC2 + ReLU
    h2 = jnp.dot(h1, w2_ref[...],
                 preferred_element_type=jnp.float32) + b2_ref[...]
    h2 = jnp.maximum(h2, 0.0).astype(jnp.bfloat16)
    # FC3 + tanh (lane-dense padded output; padded cols are exactly 0 pre-tanh)
    h3 = jnp.dot(h2, w3_ref[...],
                 preferred_element_type=jnp.float32) + b3_ref[...]
    out_ref[...] = jnp.tanh(h3).astype(out_ref.dtype)   # bf16 writeback


def init_actor_params(key, dim_observation, dim_action):
    """PyTorch nn.Linear-style init: uniform(-1/sqrt(fan_in), 1/sqrt(fan_in)).
    Weights stored [in_features, out_features] (transposed from PyTorch),
    biases [1, out_features]. Unpadded, f32 (reference layout)."""
    dims = [(dim_observation, HIDDEN1), (HIDDEN1, HIDDEN2),
            (HIDDEN2, dim_action)]
    params = {}
    for i, (fan_in, fan_out) in enumerate(dims, start=1):
        key, kw, kb = jax.random.split(key, 3)
        bound = 1.0 / jnp.sqrt(jnp.float32(fan_in))
        params[f"w{i}"] = jax.random.uniform(
            kw, (fan_in, fan_out), jnp.float32, minval=-bound, maxval=bound)
        params[f"b{i}"] = jax.random.uniform(
            kb, (1, fan_out), jnp.float32, minval=-bound, maxval=bound)
    return params


def prepare_actor_params(params):
    """One-time padding + bf16 cast for the kernel:
      * hidden 500 -> 512 (zero-pad w1 cols, b1, w2 rows) -- exact under ReLU
      * dim_action -> 128-multiple (zero-pad w3 cols, b3) -- sliced off later
      * weights bf16 (halves weight DMA bytes), biases stay f32."""
    dim_obs = params["w1"].shape[0]
    dim_action = params["w3"].shape[1]
    act_pad = _round_up(max(dim_action, 1), LANE)

    def pad2(a, shape):
        out = jnp.zeros(shape, a.dtype)
        return out.at[:a.shape[0], :a.shape[1]].set(a)

    prepped = {
        "w1": pad2(params["w1"], (dim_obs, HIDDEN1_PAD)).astype(jnp.bfloat16),
        "b1": pad2(params["b1"], (1, HIDDEN1_PAD)),
        "w2": pad2(params["w2"], (HIDDEN1_PAD, HIDDEN2)).astype(jnp.bfloat16),
        "b2": params["b2"],
        "w3": pad2(params["w3"], (HIDDEN2, act_pad)).astype(jnp.bfloat16),
        "b3": pad2(params["b3"], (1, act_pad)),
        "dim_action": dim_action,
    }
    return prepped


@functools.partial(jax.jit, static_argnames=("dim_action",))
def _actor_forward_impl(obs, w1, b1, w2, b2, w3, b3, dim_action):
    B, dim_obs = obs.shape
    act_pad = w3.shape[1]

    # Batch tile: as large as possible (amortize step overhead) but >= 2 grid
    # steps once B >= 2*SUBLANE so both v7x TensorCores are used.
    if B <= SUBLANE:
        tile_b = SUBLANE
    else:
        tile_b = min(TILE_B_MAX, _round_up(pl.cdiv(B, 2), SUBLANE))
    grid = (pl.cdiv(B, tile_b),)

    resident = lambda shape: pl.BlockSpec(shape, lambda i: (0, 0))

    out_padded = pl.pallas_call(
        actor_kernel,
        out_shape=jax.ShapeDtypeStruct((B, act_pad), jnp.bfloat16),
        grid=grid,
        in_specs=[
            pl.BlockSpec((tile_b, dim_obs), lambda i: (i, 0)),  # obs tile (f32)
            resident(w1.shape), resident(b1.shape),             # weights stay
            resident(w2.shape), resident(b2.shape),             # VMEM-resident
            resident(w3.shape), resident(b3.shape),             # across tiles
        ],
        out_specs=pl.BlockSpec((tile_b, act_pad), lambda i: (i, 0)),
        compiler_params=pltpu.CompilerParams(
            dimension_semantics=("parallel",)),
    )(obs, w1, b1, w2, b2, w3, b3)

    return out_padded[:B, :dim_action].astype(jnp.float32)


def actor_forward(obs, prepped_params):
    """obs: [B, dim_obs] f32. prepped_params: output of prepare_actor_params."""
    p = prepped_params
    return _actor_forward_impl(obs, p["w1"], p["b1"], p["w2"], p["b2"],
                               p["w3"], p["b3"], p["dim_action"])


def actor_reference(obs, params):
    h1 = jnp.maximum(obs @ params["w1"] + params["b1"], 0.0)
    h2 = jnp.maximum(h1 @ params["w2"] + params["b2"], 0.0)
    return jnp.tanh(h2 @ params["w3"] + params["b3"])


if __name__ == "__main__":
    B, dim_observation, dim_action = 8, 16, 4

    key = jax.random.PRNGKey(0)
    key, kobs = jax.random.split(key)
    obs = jax.random.normal(kobs, (B, dim_observation), jnp.float32)

    params = init_actor_params(key, dim_observation, dim_action)
    prepped = prepare_actor_params(params)

    out = actor_forward(obs, prepped)
    out = jax.block_until_ready(out)

    ref = actor_reference(obs, params)  # pure-f32 reference
    assert out.shape == (B, dim_action), out.shape
    # bf16 MXU operands / bf16 output (f32 accumulation) vs. f32 reference.
    assert jnp.allclose(out, ref, atol=2e-2, rtol=2e-2), "mismatch vs reference"

    print("KERNEL_OK")
</pallas_src>

<mosaic_0001>
module attributes {stable_mosaic.version = 11 : i64} {
  func.func @actor_kernel(%arg0: i32, %arg1: memref<8x16xf32, #tpu.memory_space<vmem>>, %arg2: memref<16x512xbf16, #tpu.memory_space<vmem>>, %arg3: memref<1x512xf32, #tpu.memory_space<vmem>>, %arg4: memref<512x128xbf16, #tpu.memory_space<vmem>>, %arg5: memref<1x128xf32, #tpu.memory_space<vmem>>, %arg6: memref<128x128xbf16, #tpu.memory_space<vmem>>, %arg7: memref<1x128xf32, #tpu.memory_space<vmem>>, %arg8: memref<8x128xbf16, #tpu.memory_space<vmem>>) attributes {dimension_semantics = [#tpu.dimension_semantics<parallel>], iteration_bounds = array<i64: 1>, scalar_prefetch = 0 : i64, scratch_operands = 0 : i64, tpu.core_type = #tpu.core_type<tc>, window_params = [{transform_indices = @transform_0, window_bounds = array<i64: 8, 16>}, {pipeline_mode = #tpu.pipeline_mode<synchronous>, transform_indices = @transform_1, window_bounds = array<i64: 16, 512>}, {pipeline_mode = #tpu.pipeline_mode<synchronous>, transform_indices = @transform_2, window_bounds = array<i64: 1, 512>}, {pipeline_mode = #tpu.pipeline_mode<synchronous>, transform_indices = @transform_3, window_bounds = array<i64: 512, 128>}, {pipeline_mode = #tpu.pipeline_mode<synchronous>, transform_indices = @transform_4, window_bounds = array<i64: 1, 128>}, {pipeline_mode = #tpu.pipeline_mode<synchronous>, transform_indices = @transform_5, window_bounds = array<i64: 128, 128>}, {pipeline_mode = #tpu.pipeline_mode<synchronous>, transform_indices = @transform_6, window_bounds = array<i64: 1, 128>}, {transform_indices = @transform_7, window_bounds = array<i64: 8, 128>}]} {
    %c0 = arith.constant 0 : index
    %c0_0 = arith.constant 0 : index
    %0 = vector.load %arg1[%c0, %c0_0] : memref<8x16xf32, #tpu.memory_space<vmem>>, vector<8x16xf32>
    %1 = arith.truncf %0 : vector<8x16xf32> to vector<8x16xbf16>
    %c0_1 = arith.constant 0 : index
    %c0_2 = arith.constant 0 : index
    %2 = vector.load %arg2[%c0_1, %c0_2] : memref<16x512xbf16, #tpu.memory_space<vmem>>, vector<16x512xbf16>
    %cst = arith.constant dense<0.000000e+00> : vector<8x512xf32>
    %3 = tpu.matmul %1, %2, %cst {dimension_numbers = #tpu.dot_dimension_numbers<[1], [0], [0], [1], [0, 0, 1, 1], [], []>} : vector<8x16xbf16>, vector<16x512xbf16>, vector<8x512xf32> -> vector<8x512xf32>
    %c0_3 = arith.constant 0 : index
    %c0_4 = arith.constant 0 : index
    %4 = vector.load %arg3[%c0_3, %c0_4] : memref<1x512xf32, #tpu.memory_space<vmem>>, vector<1x512xf32>
    %5 = vector.broadcast %4 : vector<1x512xf32> to vector<8x512xf32>
    %6 = arith.addf %3, %5 : vector<8x512xf32>
    %cst_5 = arith.constant 0.000000e+00 : f32
    %7 = vector.broadcast %cst_5 : f32 to vector<8x512xf32>
    %8 = arith.maximumf %6, %7 : vector<8x512xf32>
    %9 = arith.truncf %8 : vector<8x512xf32> to vector<8x512xbf16>
    %c0_6 = arith.constant 0 : index
    %c0_7 = arith.constant 0 : index
    %10 = vector.load %arg4[%c0_6, %c0_7] : memref<512x128xbf16, #tpu.memory_space<vmem>>, vector<512x128xbf16>
    %cst_8 = arith.constant dense<0.000000e+00> : vector<8x128xf32>
    %11 = tpu.matmul %9, %10, %cst_8 {dimension_numbers = #tpu.dot_dimension_numbers<[1], [0], [0], [1], [0, 0, 1, 1], [], []>} : vector<8x512xbf16>, vector<512x128xbf16>, vector<8x128xf32> -> vector<8x128xf32>
    %c0_9 = arith.constant 0 : index
    %c0_10 = arith.constant 0 : index
    %12 = vector.load %arg5[%c0_9, %c0_10] : memref<1x128xf32, #tpu.memory_space<vmem>>, vector<1x128xf32>
    %13 = vector.broadcast %12 : vector<1x128xf32> to vector<8x128xf32>
    %14 = arith.addf %11, %13 : vector<8x128xf32>
    %cst_11 = arith.constant 0.000000e+00 : f32
    %15 = vector.broadcast %cst_11 : f32 to vector<8x128xf32>
    %16 = arith.maximumf %14, %15 : vector<8x128xf32>
    %17 = arith.truncf %16 : vector<8x128xf32> to vector<8x128xbf16>
    %c0_12 = arith.constant 0 : index
    %c0_13 = arith.constant 0 : index
    %18 = vector.load %arg6[%c0_12, %c0_13] : memref<128x128xbf16, #tpu.memory_space<vmem>>, vector<128x128xbf16>
    %cst_14 = arith.constant dense<0.000000e+00> : vector<8x128xf32>
    %19 = tpu.matmul %17, %18, %cst_14 {dimension_numbers = #tpu.dot_dimension_numbers<[1], [0], [0], [1], [0, 0, 1, 1], [], []>} : vector<8x128xbf16>, vector<128x128xbf16>, vector<8x128xf32> -> vector<8x128xf32>
    %c0_15 = arith.constant 0 : index
    %c0_16 = arith.constant 0 : index
    %20 = vector.load %arg7[%c0_15, %c0_16] : memref<1x128xf32, #tpu.memory_space<vmem>>, vector<1x128xf32>
    %21 = vector.broadcast %20 : vector<1x128xf32> to vector<8x128xf32>
    %22 = arith.addf %19, %21 : vector<8x128xf32>
    %23 = math.tanh %22 : vector<8x128xf32>
    %24 = arith.truncf %23 : vector<8x128xf32> to vector<8x128xbf16>
    %c0_17 = arith.constant 0 : index
    %c0_18 = arith.constant 0 : index
    %25 = vector.load %arg8[%c0_17, %c0_18] : memref<8x128xbf16, #tpu.memory_space<vmem>>, vector<8x128xbf16>
    tpu.vector_store %arg8[%c0_17, %c0_18], %24 {strides = array<i32>} : memref<8x128xbf16, #tpu.memory_space<vmem>>, vector<8x128xbf16>,
    return
  }
  func.func @transform_0(%arg0: i32) -> (i32, i32) {
    %c0_i32 = arith.constant 0 : i32
    %c0_i32_0 = arith.constant 0 : i32
    return %arg0, %c0_i32 : i32, i32
  }
  func.func @transform_1(%arg0: i32) -> (i32, i32) {
    %c0_i32 = arith.constant 0 : i32
    %c0_i32_0 = arith.constant 0 : i32
    %c0_i32_1 = arith.constant 0 : i32
    return %c0_i32, %c0_i32_0 : i32, i32
  }
  func.func @transform_2(%arg0: i32) -> (i32, i32) {
    %c0_i32 = arith.constant 0 : i32
    %c0_i32_0 = arith.constant 0 : i32
    %c0_i32_1 = arith.constant 0 : i32
    return %c0_i32, %c0_i32_0 : i32, i32
  }
  func.func @transform_3(%arg0: i32) -> (i32, i32) {
    %c0_i32 = arith.constant 0 : i32
    %c0_i32_0 = arith.constant 0 : i32
    %c0_i32_1 = arith.constant 0 : i32
    return %c0_i32, %c0_i32_0 : i32, i32
  }
  func.func @transform_4(%arg0: i32) -> (i32, i32) {
    %c0_i32 = arith.constant 0 : i32
    %c0_i32_0 = arith.constant 0 : i32
    %c0_i32_1 = arith.constant 0 : i32
    return %c0_i32, %c0_i32_0 : i32, i32
  }
  func.func @transform_5(%arg0: i32) -> (i32, i32) {
    %c0_i32 = arith.constant 0 : i32
    %c0_i32_0 = arith.constant 0 : i32
    %c0_i32_1 = arith.constant 0 : i32
    return %c0_i32, %c0_i32_0 : i32, i32
  }
  func.func @transform_6(%arg0: i32) -> (i32, i32) {
    %c0_i32 = arith.constant 0 : i32
    %c0_i32_0 = arith.constant 0 : i32
    %c0_i32_1 = arith.constant 0 : i32
    return %c0_i32, %c0_i32_0 : i32, i32
  }
  func.func @transform_7(%arg0: i32) -> (i32, i32) {
    %c0_i32 = arith.constant 0 : i32
    %c0_i32_0 = arith.constant 0 : i32
    return %arg0, %c0_i32 : i32, i32
  }
}

</mosaic_0001>

<bundles_post_ra>
// kernel: _actor_forward_impl.1
= control target key start
LH: loop header
LB: loop body
LE: loop exit
PB: predicated region body
PF: predicated region fallthrough
CT: control target
= control target key end

     0   :  { %12 = vsyncpa [#allocation3], 0  ;;  %s1075_s0 = inlined_call_operand.hbm [shape: f32[8,16], index: 0, kind: input, shape index: {}]   ;;  %s1076_s1 = inlined_call_operand.hbm [shape: bf16[16,512], index: 1, kind: input, shape index: {}]   ;;  %s1077_s2 = inlined_call_operand.vmem [shape: f32[1,512], index: 2, kind: input, shape index: {}]   ;;  %s1078_s3 = inlined_call_operand.hbm [shape: bf16[512,128], index: 3, kind: input, shape index: {}]   ;;  %s1079_s4 = inlined_call_operand.vmem [shape: f32[1,128], index: 4, kind: input, shape index: {}]   ;;  %s1080_s5 = inlined_call_operand.hbm [shape: bf16[128,128], index: 5, kind: input, shape index: {}]   ;;  %s1081_s6 = inlined_call_operand.vmem [shape: f32[1,128], index: 6, kind: input, shape index: {}]   ;;  %s1082_s7 = inlined_call_operand.vmem [shape: bf16[8,128], index: 7, kind: output, shape index: {}]  }
   0x1   :  { %13 = vsyncpa [#allocation5], 0 }
   0x2   :  { %14 = vsyncpa [#allocation8], 0  ;;  %s962_s24 = smov [#allocation4]   ;;  %s868_s28 = scalar_lea.hbm %s1076_s1, 512 }
   0x3   :  { %s30_s25 = sshll.u32 %s962_s24, 4  ;;  %p869_p0 = scmp.ne.s32.totalorder %s1076_s1, %s868_s28  ;;  %s31_s25 = int_to_ptr.vmem [resolvable:$true] %s30_s25 }
   0x4   :  { %p872_p1 = scmp.lt.u32.totalorder %s868_s28, %s1076_s1 }
   0x6   :  { %p874_p2 = pnand %p872_p1, %p869_p0 }
   0x8   :  { %877 = shalt.err (!%p874_p2)
}
   0x9   :  { %s878_s10 = scalar_lea.vmem %s31_s25, 512  ;;  %p883_p4 = scmp.lt.s32.totalorder %s31_s25, %s31_s25 }
   0xa   :  { %p879_p3 = scmp.ne.s32.totalorder %s31_s25, %s878_s10  ;;  %p884_p5 = scmp.lt.s32.totalorder %s878_s10, %s878_s10 }
   0xc   :  { %p885_p6 = por %p884_p5, %p883_p4 }
   0xe   :  { %p886_p7 = pnand %p885_p6, %p879_p3 }
  0x10   :  { %889 = shalt.err (!%p886_p7)
}
  0x11   :  { %s963_s11 = smov 256   ;;  %s964_s12 = smov 16  }
  0x12   :  { %36 = dma.hbm_to_vmem [thread:$0]  %s1076_s1, 512, %s31_s25, [#allocation5], %s963_s11, %s963_s11, %s964_s12  }
  0x13   :  { %s965_s15 = smov [#allocation2]   ;;  %s966_s17 = smov [#allocation6]  }
  0x14   :  { %s21_s16 = sshll.u32 %s965_s15, 4  ;;  %s44_s18 = sshll.u32 %s966_s17, 4  ;;  %s22_s16 = int_to_ptr.vmem [resolvable:$true] %s21_s16  ;;  %s45_s18 = int_to_ptr.vmem [resolvable:$true] %s44_s18 }
  0x15   :  { %s890_s21 = scalar_lea.hbm %s1075_s0, 128 }
  0x16   :  { %p891_p8 = scmp.ne.s32.totalorder %s1075_s0, %s890_s21  ;;  %p894_p9 = scmp.lt.u32.totalorder %s890_s21, %s1075_s0 }
  0x18   :  { %p896_p10 = pnand %p894_p9, %p891_p8 }
  0x1a   :  { %899 = shalt.err (!%p896_p10)
}
  0x1b   :  { %s900_s1 = scalar_lea.vmem %s22_s16, 128  ;;  %p905_p12 = scmp.lt.s32.totalorder %s22_s16, %s22_s16 }
  0x1c   :  { %p901_p11 = scmp.ne.s32.totalorder %s22_s16, %s900_s1  ;;  %p906_p13 = scmp.lt.s32.totalorder %s900_s1, %s900_s1 }
  0x1e   :  { %p907_p0 = por %p906_p13, %p905_p12 }
  0x20   :  { %p908_p1 = pnand %p907_p0, %p901_p11 }
  0x22   :  { %911 = shalt.err (!%p908_p1)
}
  0x23   :  { %24 = dma.hbm_to_vmem [thread:$0]  %s1075_s0, 128, %s22_s16, [#allocation3]  }
  0x24   :  { %s912_s30 = scalar_lea.hbm %s1078_s3, 4096 }
  0x25   :  { %p913_p2 = scmp.ne.s32.totalorder %s1078_s3, %s912_s30  ;;  %p916_p3 = scmp.lt.u32.totalorder %s912_s30, %s1078_s3 }
  0x27   :  { %p918_p4 = pnand %p916_p3, %p913_p2 }
  0x29   :  { %921 = shalt.err (!%p918_p4)
}
  0x2a   :  { %s922_s12 = scalar_lea.vmem %s45_s18, 4096  ;;  %p927_p6 = scmp.lt.s32.totalorder %s45_s18, %s45_s18 }
  0x2b   :  { %p923_p5 = scmp.ne.s32.totalorder %s45_s18, %s922_s12  ;;  %p928_p7 = scmp.lt.s32.totalorder %s922_s12, %s922_s12 }
  0x2d   :  { %p929_p8 = por %p928_p7, %p927_p6 }
  0x2f   :  { %p930_p9 = pnand %p929_p8, %p923_p5 }
  0x31   :  { %933 = shalt.err (!%p930_p9)
}
  0x32   :  { %s967_s0 = smov 64   ;;  %s968_s13 = smov 4  }
  0x33   :  { %50 = dma.hbm_to_vmem [thread:$0]  %s1078_s3, 4096, %s45_s18, [#allocation5], %s967_s0, %s967_s0, %s968_s13  }
  0x34   :  { %s969_s16 = smov [#allocation7]   ;;  %s934_s21 = scalar_lea.hbm %s1080_s5, 1024 }
  0x35   :  { %s58_s17 = sshll.u32 %s969_s16, 4  ;;  %p935_p10 = scmp.ne.s32.totalorder %s1080_s5, %s934_s21  ;;  %s59_s17 = int_to_ptr.vmem [resolvable:$true] %s58_s17 }
  0x36   :  { %p938_p11 = scmp.lt.u32.totalorder %s934_s21, %s1080_s5 }
  0x38   :  { %p940_p12 = pnand %p938_p11, %p935_p10 }
  0x3a   :  { %943 = shalt.err (!%p940_p12)
}
  0x3b   :  { %s944_s1 = scalar_lea.vmem %s59_s17, 1024  ;;  %p949_p0 = scmp.lt.s32.totalorder %s59_s17, %s59_s17 }
  0x3c   :  { %p945_p13 = scmp.ne.s32.totalorder %s59_s17, %s944_s1  ;;  %p950_p1 = scmp.lt.s32.totalorder %s944_s1, %s944_s1 }
  0x3e   :  { %p951_p2 = por %p950_p1, %p949_p0 }
  0x40   :  { %p952_p3 = pnand %p951_p2, %p945_p13 }
  0x42   :  { %955 = shalt.err (!%p952_p3)
}
  0x43   :  { %64 = dma.hbm_to_vmem [thread:$0]  %s1080_s5, 1024, %s59_s17, [#allocation8], %s967_s0, %s967_s0, %s968_s13  }
  0x44   :  { %956 = dma.done.wait [#allocation3], 128  }
  0x45   :  { %957 = vsyncadd [#allocation3], 4294967168 }
  0x46   :  { %958 = dma.done.wait [#allocation5], 4608  }
  0x47   :  { %959 = vsyncadd [#allocation5], 4294962688 }
  0x48   :  { %960 = dma.done.wait [#allocation8], 1024  }
  0x49   :  { %961 = vsyncadd [#allocation8], 4294966272  ;;  %v970_v0 = vmov 0   ;;  %v820_v1 = vld [vmem:[#allocation4 + $0x4] ss:$16 sps:$4 sm:$0xff]   ;;  %v80_v3 = vld [vmem:[#allocation2] sm:$0xff]  ;;  %v88_v40 = vlaneseq }
  0x4a   :  { %164 = vmatprep.mubr.bf16.mxu1 %v970_v0  ;;  %v822_v2 = vld [vmem:[#allocation4] ss:$16 sps:$4 sm:$0xff]   ;;  %132 = vmatprep.subr.bf16.mxu1 %v820_v1  ;;  %v81_v4 = vpack.c.bf16 %v80_v3, %v80_v3  ;;  %v823_v5 = vld [vmem:[#allocation4 + $0x8] ss:$16 sps:$4 sm:$0xff]   ;;  %v825_v6 = vld [vmem:[#allocation4 + $0xc] ss:$16 sps:$4 sm:$0xff]  }
  0x4b   :  { %133 = vmatpush1.bf16.msra.mxu1 %v822_v2  ;;  %vm128_vm0 = vcmask 130048   ;;  %v826_v7 = vld [vmem:[#allocation6 + $0x40] sm:$0xff]   ;;  %v828_v9 = vld [vmem:[#allocation6 + $0x48] sm:$0xff]   ;;  %v830_v11 = vld [vmem:[#allocation6 + $0x50] sm:$0xff]   ;;  %v971_v39 = vmov 0.0   ;;  %v89_v41 = vshrl.u32 %v88_v40, 7 }
  0x4c   :  { %173 = vmatprep.subr.bf16.mxu1 %v825_v6  ;;  %v827_v8 = vld [vmem:[#allocation6] sm:$0xff]   ;;  %736 = vmatprep.subr.bf16.mxu0 %v826_v7  ;;  %v829_v10 = vld [vmem:[#allocation6 + $0x8] sm:$0xff]   ;;  %v832_v13 = vld [vmem:[#allocation6 + $0x10] sm:$0xff]   ;;  %vm972_vm1 = vmmov 0  }
  0x4d   :  { %737 = vmatpush3.bf16.msra.mxu0 %v827_v8  ;;  %v831_v12 = vld [vmem:[#allocation6 + $0xc0] sm:$0xff]   ;;  %v834_v15 = vld [vmem:[#allocation6 + $0x58] sm:$0xff]   ;;  %v835_v16 = vld [vmem:[#allocation6 + $0xc8] sm:$0xff]   ;;  %v90_v42 = vsub.s32 0, %v89_v41  ;;  %v94_v44 = vsub.s32 1, %v89_v41  ;;  %v98_v50 = vsub.s32 2, %v89_v41 }
  0x4e   :  { %692 = vmatmul.mubr.msk.bf16.vlgmr.msra.gmra.mrb[0].mxu1 %vm128_vm0, %v81_v4  ;;  %738 = vmatprep.subr.bf16.mxu0 %v828_v9  ;;  %v833_v14 = vld [vmem:[#allocation6 + $0x80] sm:$0xff]   ;;  %v836_v17 = vld [vmem:[#allocation6 + $0x18] sm:$0xff]   ;;  %v837_v18 = vld [vmem:[#allocation6 + $0x88] sm:$0xff]   ;;  %v102_v53 = vsub.s32 3, %v89_v41 }
  0x4f   :  { %174 = vmatpush1.bf16.msra.mxu1 %v823_v5  ;;  %205 = vmatprep.mubr.bf16.mxu1 %v970_v0  ;;  %v838_v19 = vld [vmem:[#allocation6 + $0x60] sm:$0xff]   ;;  %v839_v20 = vld [vmem:[#allocation6 + $0xd0] sm:$0xff]   ;;  %v842_v23 = vld [vmem:[#allocation6 + $0x68] sm:$0xff]  }
  0x50   :  { %758 = vmatprep.subr.bf16.mxu1 %v831_v12  ;;  %v840_v21 = vld [vmem:[#allocation6 + $0x20] sm:$0xff]   ;;  %v841_v22 = vld [vmem:[#allocation6 + $0x90] sm:$0xff]   ;;  %v843_v24 = vld [vmem:[#allocation6 + $0xd8] sm:$0xff]  }
  0x51   :  { %739 = vmatpush3.bf16.msra.mxu0 %v829_v10  ;;  %v844_v25 = vld [vmem:[#allocation6 + $0x28] sm:$0xff]   ;;  %v845_v26 = vld [vmem:[#allocation6 + $0x98] sm:$0xff]   ;;  %v846_v27 = vld [vmem:[#allocation6 + $0x70] sm:$0xff]  }
  0x52   :  { %740 = vmatprep.subr.bf16.mxu0 %v830_v11  ;;  %v847_v28 = vld [vmem:[#allocation6 + $0xe0] sm:$0xff]   ;;  %v848_v29 = vld [vmem:[#allocation6 + $0x30] sm:$0xff]   ;;  %v850_v31 = vld [vmem:[#allocation6 + $0x78] sm:$0xff]  }
  0x53   :  { %v849_v30 = vld [vmem:[#allocation6 + $0xa0] sm:$0xff]   ;;  %v851_v32 = vld [vmem:[#allocation6 + $0xe8] sm:$0xff]   ;;  %v852_v33 = vld [vmem:[#allocation6 + $0x38] sm:$0xff]  }
  0x54   :  { %v853_v34 = vld [vmem:[#allocation6 + $0xa8] sm:$0xff]   ;;  %v854_v35 = vld [vmem:[#allocation6 + $0xf0] sm:$0xff]   ;;  %v856_v37 = vld [vmem:[#allocation6 + $0xf8] sm:$0xff]  }
  0x55   :  { %741 = vmatpush3.bf16.msra.mxu0 %v832_v13  ;;  %v855_v36 = vld [vmem:[#allocation6 + $0xb0] sm:$0xff]   ;;  %v857_v38 = vld [vmem:[#allocation6 + $0xb8] sm:$0xff]   ;;  %v858_v60 = vld [vmem:[#allocation7] sm:$0xff]  }
  0x56   :  { %693 = vmatmul.mubr.msk.bf16.vlgmr.msra.gmra.mrb[4].mxu1 %vm128_vm0, %v81_v4  ;;  %742 = vmatprep.subr.bf16.mxu0 %v834_v15  ;;  %v86_v43 = vld [vmem:[%s1077_s2] sm:$0xf]  ;;  %v859_v3 = vld [vmem:[#allocation7 + $0x8] sm:$0xff]   ;;  %v860_v8 = vld [vmem:[#allocation7 + $0x10] sm:$0xff]  }
  0x57   :  { %759 = vmatpush3.bf16.msra.mxu1 %v833_v14  ;;  %v91_v45 = vrot.slane %v86_v43, %v90_v42  ;;  %v95_v46 = vrot.slane %v86_v43, %v94_v44  ;;  %v99_v57 = vrot.slane %v86_v43, %v98_v50  ;;  %v103_v59 = vrot.slane %v86_v43, %v102_v53  ;;  %v861_v10 = vld [vmem:[#allocation7 + $0x18] sm:$0xff]   ;;  %v862_v11 = vld [vmem:[#allocation7 + $0x20] sm:$0xff]   ;;  %v863_v12 = vld [vmem:[#allocation7 + $0x28] sm:$0xff]  }
  0x58   :  { %760 = vmatprep.subr.bf16.mxu1 %v835_v16  ;;  %v864_v13 = vld [vmem:[#allocation7 + $0x30] sm:$0xff]   ;;  %v865_v14 = vld [vmem:[#allocation7 + $0x38] sm:$0xff]  }
  0x59   :  { %743 = vmatpush3.bf16.msra.mxu0 %v836_v17 }
  0x5a   :  { %744 = vmatprep.subr.bf16.mxu0 %v838_v19 }
  0x5b   :  { %761 = vmatpush3.bf16.msra.mxu1 %v837_v18 }
  0x5c   :  { %762 = vmatprep.subr.bf16.mxu1 %v839_v20  ;;  %v694_v20 = vld [vmem:[%s1079_s4] ss:$0 sm:$0xff] }
  0x5d   :  { %745 = vmatpush3.bf16.msra.mxu0 %v840_v21 }
  0x5e   :  { %746 = vmatprep.subr.bf16.mxu0 %v842_v23 }
  0x5f   :  { %763 = vmatpush3.bf16.msra.mxu1 %v841_v22 }
  0x60   :  { %764 = vmatprep.subr.bf16.mxu1 %v843_v24 }
  0x61   :  { %747 = vmatpush3.bf16.msra.mxu0 %v844_v25 }
  0x62   :  { %748 = vmatprep.subr.bf16.mxu0 %v846_v27 }
  0x63   :  { %765 = vmatpush3.bf16.msra.mxu1 %v845_v26 }
  0x64   :  { %766 = vmatprep.subr.bf16.mxu1 %v847_v28 }
  0x65   :  { %749 = vmatpush3.bf16.msra.mxu0 %v848_v29 }
  0x66   :  { %750 = vmatprep.subr.bf16.mxu0 %v850_v31 }
  0x67   :  { %767 = vmatpush3.bf16.msra.mxu1 %v849_v30  ;;  %v727_v30 = vld [vmem:[%s1081_s6] ss:$0 sm:$0xff] }
  0x68   :  { %768 = vmatprep.subr.bf16.mxu1 %v851_v32 }
  0x69   :  { %751 = vmatpush3.bf16.msra.mxu0 %v852_v33 }
  0x6a   :  { %789 = vmatprep.subr.bf16.mxu0 %v971_v39 }
  0x6b   :  { %769 = vmatpush3.bf16.msra.mxu1 %v853_v34 }
  0x6c   :  { %770 = vmatprep.subr.bf16.mxu1 %v854_v35 }
  0x6f   :  { %771 = vmatpush3.bf16.msra.mxu1 %v855_v36 }
  0x70   :  { %772 = vmatprep.subr.bf16.mxu1 %v856_v37 }
  0x73   :  { %773 = vmatpush3.bf16.msra.mxu1 %v857_v38 }
 0x121   :  { %v166_v47 = vpop.f32.mrb[0].mxu1 }
 0x122   :  { %v167_v48 = vadd.f32 %v166_v47, %v91_v45  ;;  %v168_v49 = vpop.f32.mrb[1].mxu1 }
 0x123   :  { %v169_v51 = vadd.f32 %v168_v49, %v95_v46  ;;  %v170_v52 = vpop.f32.mrb[2].mxu1 }
 0x124   :  { %v214_v54 = vmax.f32 %v167_v48, 0.0  ;;  %v171_v55 = vpop.f32.mrb[3].mxu1 }
 0x125   :  { %v215_v56 = vmax.f32 %v169_v51, 0.0 }
 0x126   :  { %v218_v61 = vpack.c.bf16 %v214_v54, %v214_v54 }
 0x127   :  { %v219_v58 = vpack.c.bf16 %v215_v56, %v215_v56 }
 0x129   :  { %v207_v62 = vpop.f32.mrb[4].mxu1  ;;  %517 = vmatprep.mubr.bf16.mxu0 %v219_v58 }
 0x12a   :  { %v208_v63 = vadd.f32 %v207_v62, %v99_v57  ;;  %v209_v0 = vpop.f32.mrb[5].mxu1  ;;  %518 = vmatmul.mubr.bf16.vlgmr.msra.gmra.mrb[0].mxu0 %v218_v61 }
 0x12b   :  { %v210_v1 = vadd.f32 %v209_v0, %v103_v59  ;;  %v211_v2 = vpop.f32.mrb[6].mxu1  ;;  %790 = vmatpush3.bf16.msra.mxu0 %v858_v60  ;;  %805 = vmatprep.mubr.msk.bf16.mxu0 %vm972_vm1, %v971_v39 }
 0x12c   :  { %v216_v4 = vmax.f32 %v208_v63, 0.0  ;;  %v212_v5 = vpop.f32.mrb[7].mxu1  ;;  %791 = vmatprep.subr.bf16.mxu0 %v971_v39 }
 0x12d   :  { %v217_v6 = vmax.f32 %v210_v1, 0.0 }
 0x12e   :  { %v220_v9 = vpack.c.bf16 %v216_v4, %v216_v4 }
 0x12f   :  { %v221_v7 = vpack.c.bf16 %v217_v6, %v217_v6  ;;  %792 = vmatpush3.bf16.msra.mxu0 %v859_v3 }
 0x130   :  { %793 = vmatprep.subr.bf16.mxu0 %v971_v39 }
 0x131   :  { %557 = vmatprep.mubr.bf16.mxu1 %v221_v7 }
 0x132   :  { %558 = vmatmul.mubr.bf16.vlgmr.msra.gmra.mrb[8].mxu1 %v220_v9 }
 0x133   :  { %794 = vmatpush3.bf16.msra.mxu0 %v860_v8 }
 0x134   :  { %795 = vmatprep.subr.bf16.mxu0 %v971_v39 }
 0x137   :  { %796 = vmatpush3.bf16.msra.mxu0 %v861_v10 }
 0x138   :  { %797 = vmatprep.subr.bf16.mxu0 %v971_v39 }
 0x13b   :  { %798 = vmatpush3.bf16.msra.mxu0 %v862_v11 }
 0x13c   :  { %799 = vmatprep.subr.bf16.mxu0 %v971_v39 }
 0x13f   :  { %800 = vmatpush3.bf16.msra.mxu0 %v863_v12 }
 0x140   :  { %801 = vmatprep.subr.bf16.mxu0 %v971_v39 }
 0x143   :  { %802 = vmatpush3.bf16.msra.mxu0 %v864_v13 }
 0x144   :  { %803 = vmatprep.subr.bf16.mxu0 %v971_v39 }
 0x147   :  { %804 = vmatpush3.bf16.msra.mxu0 %v865_v14 }
 0x1fd   :  { %v752_v15 = vpop.f32.mrb[0].mxu0 }
 0x1fe   :  { %v753_v16 = vpop.f32.mrb[1].mxu0 }
 0x1ff   :  { %v754_v17 = vadd.f32 %v753_v16, %v752_v15  ;;  %v755_v18 = vpop.f32.mrb[2].mxu0 }
 0x200   :  { %v756_v19 = vpop.f32.mrb[3].mxu0 }
 0x201   :  { %v520_v23 = vadd.f32 %v754_v17, %v694_v20 }
 0x205   :  { %v774_v21 = vpop.f32.mrb[8].mxu1 }
 0x206   :  { %v775_v22 = vpop.f32.mrb[9].mxu1 }
 0x207   :  { %v776_v24 = vadd.f32 %v775_v22, %v774_v21  ;;  %v777_v25 = vpop.f32.mrb[10].mxu1 }
 0x208   :  { %v778_v26 = vpop.f32.mrb[11].mxu1 }
 0x209   :  { %v560_v27 = vadd.f32 %v776_v24, %v520_v23 }
 0x20b   :  { %v565_v28 = vmax.f32 %v560_v27, 0.0 }
 0x20d   :  { %v566_v29 = vpack.c.bf16 %v565_v28, %v565_v28 }
 0x20f   :  { %806 = vmatmul.mubr.bf16.vlgmr.msra.gmra.mrb[4].mxu0 %v566_v29 }
 0x2e2   :  { %v672_v31 = vpop.f32.mrb[4].mxu0 }
 0x2e3   :  { %v673_v32 = vadd.f32 %v727_v30, %v672_v31  ;;  %v807_v33 = vpop.f32.mrb[5].mxu0 }
 0x2e4   :  { %v675_v34 = vpop.f32.mrb[6].mxu0 }
 0x2e5   :  { %866 = vtanh.f32 %v673_v32  ;;  %v808_v35 = vpop.f32.mrb[7].mxu0 }
 0x2ef   :  { %v867_v36 = vpop.eup %866 }
 0x2f0   :  { %v679_v37 = vpack.c.bf16 %v867_v36, %v867_v36 }
 0x2f2   :  { %680 = vst [vmem:[%s1082_s7] sm:$0xf] %v679_v37 }
 0x2f3   :  { %685 = vsyncpa [#allocation3], 1 }
 0x2f4   :  { %686 = vsyncpa [#allocation5], 1 }
 0x2f5   :  { %687 = vsyncpa [#allocation8], 1 }

</bundles_post_ra>
